<compile_context>
chip_gen: v6e
topology: v6e:2x2x1
jax: 0.10.0
libtpu: 0.0.40
codegen_flags: <defaults>
</compile_context>

<pallas_src>
import math

import jax
import jax.numpy as jnp
from jax.experimental import pallas as pl
from jax.experimental.pallas import tpu as pltpu

_TARGET_TILE_BYTES = 2 << 20      # ~2 MiB of x per grid step
_PALLAS_MIN_BYTES = 1 << 20       # below this a fused XLA add beats a launch


def _add_pe_kernel(x_ref, pe_ref, o_ref):
    # x_ref / o_ref: (B, tS, F) tiles; pe_ref: (1, tS, F) broadcast over batch.
    o_ref[...] = x_ref[...] + pe_ref[...]


def make_pe_table(d_model: int, max_len: int) -> jnp.ndarray:
    """Deterministic sinusoidal PE buffer, exactly as in the PyTorch __init__."""
    position = jnp.arange(max_len, dtype=jnp.float32)[:, None]             # (L, 1)
    div_term = jnp.exp(
        jnp.arange(0, d_model, 2, dtype=jnp.float32)
        * (-math.log(10000.0) / d_model)
    )
    pe = jnp.zeros((max_len, d_model), dtype=jnp.float32)
    pe = pe.at[:, 0::2].set(jnp.sin(position * div_term))
    pe = pe.at[:, 1::2].set(jnp.cos(position * div_term))
    pe = pe[:, :-1]                                                        # (L, d_model-1)
    return pe[None]                                                        # (1, L, d_model-1)


def _choose_seq_tile(B, S, F, itemsize, seq_tile=None):
    if seq_tile is not None:
        return min(seq_tile, S)
    budget = max(1, _TARGET_TILE_BYTES // max(1, B * F * itemsize))
    if budget >= S:
        return S                       # full seq in one block (allowed: == dim)
    return max(8, (budget // 8) * 8)   # multiple of 8 sublanes; ragged tail OK


def positional_encoding(x: jnp.ndarray, pe: jnp.ndarray, *,
                        use_pallas=None, seq_tile=None) -> jnp.ndarray:
    """x: (B, S, F) with F == pe.shape[-1]; returns x + pe[:, :S] (eval dropout)."""
    B, S, F = x.shape
    assert pe.shape[0] == 1 and pe.shape[2] == F and S <= pe.shape[1]

    # Slice + cast pe once ((1, S, F) bytes -- 1/B of x's traffic).
    pe_slice = pe[:, :S, :].astype(x.dtype)

    itemsize = jnp.dtype(x.dtype).itemsize
    if use_pallas is None:
        use_pallas = B * S * F * itemsize >= _PALLAS_MIN_BYTES
    if not use_pallas:
        return x + pe_slice            # tiny input: fused XLA add wins

    tS = _choose_seq_tile(B, S, F, itemsize, seq_tile)
    grid = (pl.cdiv(S, tS),)

    return pl.pallas_call(
        _add_pe_kernel,
        out_shape=jax.ShapeDtypeStruct((B, S, F), x.dtype),
        grid_spec=pl.GridSpec(
            grid=grid,
            in_specs=[
                pl.BlockSpec((B, tS, F), lambda s: (0, s, 0)),   # x tile
                pl.BlockSpec((1, tS, F), lambda s: (0, s, 0)),   # pe tile (batch-bcast)
            ],
            out_specs=pl.BlockSpec((B, tS, F), lambda s: (0, s, 0)),
        ),
        compiler_params=pltpu.CompilerParams(
            dimension_semantics=("parallel",),   # seq axis shards across v7x's 2 TCs
        ),
    )(x, pe_slice)


if __name__ == "__main__":
    # Shapes consistent with the forward: batch=2, seq=8, d_model=32
    # -> features = d_model - 1 = 31 (the pe buffer drops its last column).
    batch, seq_len, d_model, max_len = 2, 8, 32, 600
    features = d_model - 1

    key = jax.random.PRNGKey(0)
    k1, k2 = jax.random.split(key)

    pe = make_pe_table(d_model, max_len)                      # (1, 600, 31)

    # --- main demo (single block, full-seq tile), forced through Pallas ---
    x = jax.random.normal(k1, (batch, seq_len, features), dtype=jnp.float32)
    out = jax.block_until_ready(positional_encoding(x, pe, use_pallas=True))
    ref = x + pe[:, :seq_len, :]
    assert out.shape == (batch, seq_len, features)
    assert jnp.allclose(out, ref, atol=1e-6, rtol=1e-6)

    # --- multi-tile grid path (grid=(4,), tile divides seq), forced Pallas ---
    seq_big = 512
    xb = jax.random.normal(k2, (4, seq_big, features), dtype=jnp.float32)
    out_big = jax.block_until_ready(
        positional_encoding(xb, pe, use_pallas=True, seq_tile=128))
    ref_big = xb + pe[:, :seq_big, :]
    assert jnp.allclose(out_big, ref_big, atol=1e-6, rtol=1e-6)

    # --- auto-dispatch (tiny -> XLA fallback) gives the same result ---
    out_small = jax.block_until_ready(positional_encoding(x, pe))
    assert jnp.allclose(out_small, ref, atol=1e-6, rtol=1e-6)

    print("KERNEL_OK")
</pallas_src>

<mosaic_0001>
module attributes {stable_mosaic.version = 11 : i64} {
  func.func @_add_pe_kernel(%arg0: i32, %arg1: memref<2x8x31xf32, #tpu.memory_space<vmem>>, %arg2: memref<1x8x31xf32, #tpu.memory_space<vmem>>, %arg3: memref<2x8x31xf32, #tpu.memory_space<vmem>>) attributes {dimension_semantics = [#tpu.dimension_semantics<parallel>], iteration_bounds = array<i64: 1>, scalar_prefetch = 0 : i64, scratch_operands = 0 : i64, tpu.core_type = #tpu.core_type<tc>, window_params = [{transform_indices = @transform_0, window_bounds = array<i64: 2, 8, 31>}, {transform_indices = @transform_1, window_bounds = array<i64: 1, 8, 31>}, {transform_indices = @transform_2, window_bounds = array<i64: 2, 8, 31>}]} {
    %c0 = arith.constant 0 : index
    %c0_0 = arith.constant 0 : index
    %c0_1 = arith.constant 0 : index
    %0 = vector.load %arg1[%c0, %c0_0, %c0_1] : memref<2x8x31xf32, #tpu.memory_space<vmem>>, vector<2x8x31xf32>
    %c0_2 = arith.constant 0 : index
    %c0_3 = arith.constant 0 : index
    %c0_4 = arith.constant 0 : index
    %1 = vector.load %arg2[%c0_2, %c0_3, %c0_4] : memref<1x8x31xf32, #tpu.memory_space<vmem>>, vector<1x8x31xf32>
    %2 = vector.broadcast %1 : vector<1x8x31xf32> to vector<2x8x31xf32>
    %3 = arith.addf %0, %2 : vector<2x8x31xf32>
    %c0_5 = arith.constant 0 : index
    %c0_6 = arith.constant 0 : index
    %c0_7 = arith.constant 0 : index
    %4 = vector.load %arg3[%c0_5, %c0_6, %c0_7] : memref<2x8x31xf32, #tpu.memory_space<vmem>>, vector<2x8x31xf32>
    tpu.vector_store %arg3[%c0_5, %c0_6, %c0_7], %3 {strides = array<i32>} : memref<2x8x31xf32, #tpu.memory_space<vmem>>, vector<2x8x31xf32>,
    return
  }
  func.func @transform_0(%arg0: i32) -> (i32, i32, i32) {
    %c0_i32 = arith.constant 0 : i32
    %c0_i32_0 = arith.constant 0 : i32
    %c0_i32_1 = arith.constant 0 : i32
    return %c0_i32, %arg0, %c0_i32_0 : i32, i32, i32
  }
  func.func @transform_1(%arg0: i32) -> (i32, i32, i32) {
    %c0_i32 = arith.constant 0 : i32
    %c0_i32_0 = arith.constant 0 : i32
    %c0_i32_1 = arith.constant 0 : i32
    return %c0_i32, %arg0, %c0_i32_0 : i32, i32, i32
  }
  func.func @transform_2(%arg0: i32) -> (i32, i32, i32) {
    %c0_i32 = arith.constant 0 : i32
    %c0_i32_0 = arith.constant 0 : i32
    %c0_i32_1 = arith.constant 0 : i32
    return %c0_i32, %arg0, %c0_i32_0 : i32, i32, i32
  }
}

</mosaic_0001>

<bundles_post_ra>
// kernel: tpu_custom_call.1
= control target key start
LH: loop header
LB: loop body
LE: loop exit
PB: predicated region body
PF: predicated region fallthrough
CT: control target
= control target key end

     0   :  { %7 = vsyncpa [#allocation3], 0  ;;  %s170_s0 = inlined_call_operand.hbm [shape: f32[2,8,31], index: 0, kind: input, shape index: {}]   ;;  %s171_s1 = inlined_call_operand.hbm [shape: f32[1,8,31], index: 1, kind: input, shape index: {}]   ;;  %s172_s2 = inlined_call_operand.hbm [shape: f32[2,8,31], index: 2, kind: output, shape index: {}]  }
   0x1   :  { %8 = vsyncpa [#allocation6], 0 }
   0x2   :  { %9 = vsyncpa [#allocation4], 0  ;;  %s135_s9 = smov [#allocation2]  }
   0x3   :  { %s15_s10 = sshll.u32 %s135_s9, 4  ;;  %s16_s10 = int_to_ptr.vmem [resolvable:$true] %s15_s10 }
   0x4   :  { %s77_s11 = scalar_lea.vmem %s16_s10, 256  ;;  %p82_p1 = scmp.lt.s32.totalorder %s16_s10, %s16_s10 }
   0x5   :  { %p78_p0 = scmp.ne.s32.totalorder %s16_s10, %s77_s11  ;;  %p83_p2 = scmp.lt.s32.totalorder %s77_s11, %s77_s11 }
   0x7   :  { %p84_p3 = por %p83_p2, %p82_p1 }
   0x9   :  { %p85_p4 = pnand %p84_p3, %p78_p0 }
   0xb   :  { %88 = shalt.err (!%p85_p4)
}
   0xc   :  { %s136_s12 = smov 128   ;;  %s137_s13 = smov 8  }
   0xd   :  { %21 = dma.hbm_to_vmem [thread:$0]  %s170_s0, 256, %s16_s10, [#allocation3], %s136_s12, %s136_s12, %s137_s13  }
   0xe   :  { %s138_s16 = smov [#allocation5]  }
   0xf   :  { %s28_s17 = sshll.u32 %s138_s16, 4  ;;  %s29_s17 = int_to_ptr.vmem [resolvable:$true] %s28_s17 }
  0x10   :  { %s97_s18 = scalar_lea.vmem %s29_s17, 128  ;;  %p102_p6 = scmp.lt.s32.totalorder %s29_s17, %s29_s17 }
  0x11   :  { %p98_p5 = scmp.ne.s32.totalorder %s29_s17, %s97_s18  ;;  %p103_p7 = scmp.lt.s32.totalorder %s97_s18, %s97_s18 }
  0x13   :  { %p104_p8 = por %p103_p7, %p102_p6 }
  0x15   :  { %p105_p9 = pnand %p104_p8, %p98_p5 }
  0x17   :  { %108 = shalt.err (!%p105_p9)
}
  0x18   :  { %31 = dma.hbm_to_vmem [thread:$0]  %s171_s1, 128, %s29_s17, [#allocation6]  }
  0x19   :  { %129 = dma.done.wait [#allocation3], 256  }
  0x1a   :  { %130 = vsyncadd [#allocation3], 4294967040 }
  0x1b   :  { %131 = dma.done.wait [#allocation6], 128  }
  0x1c   :  { %132 = vsyncadd [#allocation6], 4294967168  ;;  %s139_s21 = smov [#allocation7]   ;;  %v38_v0 = vld [vmem:[#allocation2] sm:$0xff]  ;;  %v40_v1 = vld [vmem:[#allocation5] sm:$0xff]  ;;  %vm43_vm0 = vcmask 252928  }
  0x1d   :  { %s51_s0 = sshll.u32 %s139_s21, 4  ;;  %v39_v2 = vld [vmem:[#allocation2 + $0x8] sm:$0xff]  ;;  %v41_v3 = vadd.f32 %v40_v1, %v38_v0  ;;  %s52_s0 = int_to_ptr.vmem [resolvable:$true] %s51_s0 }
  0x1e   :  { %v42_v4 = vadd.f32 %v40_v1, %v39_v2  ;;  %s109_s22 = scalar_lea.vmem %s52_s0, 256  ;;  %p114_p11 = scmp.lt.s32.totalorder %s52_s0, %s52_s0 }
  0x1f   :  { %44 = vst.msk [vmem:[#allocation7] sm:$0xff] %vm43_vm0, %v41_v3  ;;  %p110_p10 = scmp.ne.s32.totalorder %s52_s0, %s109_s22  ;;  %p115_p12 = scmp.lt.s32.totalorder %s109_s22, %s109_s22 }
  0x20   :  { %45 = vst.msk [vmem:[#allocation7 + $0x8] sm:$0xff] %vm43_vm0, %v42_v4 }
  0x21   :  { %p116_p13 = por %p115_p12, %p114_p11 }
  0x23   :  { %p117_p0 = pnand %p116_p13, %p110_p10 }
  0x25   :  { %120 = shalt.err (!%p117_p0)
}
  0x26   :  { %57 = dma.vmem_to_hbm [thread:$0]  %s52_s0, 256, %s172_s2, [#allocation4], %s136_s12, %s136_s12, %s137_s13  }
  0x27   :  { %133 = dma.done.wait [#allocation4], 256  }
  0x28   :  { %134 = vsyncadd [#allocation4], 4294967040 }
  0x29   :  { %61 = vsyncpa [#allocation3], 1 }
  0x2a   :  { %62 = vsyncpa [#allocation6], 1 }
  0x2b   :  { %63 = vsyncpa [#allocation4], 1 }

</bundles_post_ra>
